<compile_context>
chip_gen: v7x
topology: tpu7x:2x2x1
jax: 0.10.0
libtpu: 0.0.40
codegen_flags: <defaults>
</compile_context>

<pallas_src>
import functools

import jax
import jax.numpy as jnp
from jax.experimental import pallas as pl
from jax.experimental.pallas import tpu as pltpu


# ------------------------------ helpers ------------------------------------

def _round_up(x, m):
    return ((x + m - 1) // m) * m


def _pick_tile(n_pad, cap):
    """Largest multiple of 128 <= cap that divides n_pad (n_pad, cap are multiples of 128)."""
    t = min(cap, n_pad)
    while n_pad % t != 0:
        t -= 128
    return max(t, 128)


def _pad2(a, rows, cols, dtype):
    out = jnp.pad(a, ((0, rows - a.shape[0]), (0, cols - a.shape[1])))
    return out.astype(dtype)


# ------------------------------ kernels ------------------------------------

def _proj_kernel(x_ref, w_ref, out_ref, acc_ref):
    """XW1_rowtile = X_rowtile @ W1 ; K-reduction over feature dim."""
    k = pl.program_id(1)

    @pl.when(k == 0)
    def _():
        acc_ref[...] = jnp.zeros_like(acc_ref)

    acc_ref[...] += jnp.dot(x_ref[...], w_ref[...],
                            preferred_element_type=jnp.float32)

    @pl.when(k == pl.num_programs(1) - 1)
    def _():
        out_ref[...] = acc_ref[...].astype(out_ref.dtype)


def _gcn_hidden_kernel(a_ref, xw_ref, b1_ref, h_ref, acc_ref):
    """h_rowtile = relu(A_rowtile @ XW1 + b1); K-reduction over A columns."""
    k = pl.program_id(1)

    @pl.when(k == 0)
    def _():
        acc_ref[...] = jnp.zeros_like(acc_ref)

    acc_ref[...] += jnp.dot(a_ref[...], xw_ref[...],
                            preferred_element_type=jnp.float32)

    @pl.when(k == pl.num_programs(1) - 1)
    def _():
        h_ref[...] = jnp.maximum(acc_ref[...] + b1_ref[...], 0.0).astype(h_ref.dtype)


def _gcn_z_kernel(a_ref, h_ref, w23_ref, b23_ref, noise_ref,
                  z_ref, zb_ref, zt_ref, acc_ref, *, h2p):
    """AH computed once per row-tile; fused [W2|W3] matmul + reparameterization.

    Emits z (f32, returned), z (bf16) and z^T (bf16) for the decoder.
    """
    k = pl.program_id(1)

    @pl.when(k == 0)
    def _():
        acc_ref[...] = jnp.zeros_like(acc_ref)

    acc_ref[...] += jnp.dot(a_ref[...], h_ref[...],
                            preferred_element_type=jnp.float32)

    @pl.when(k == pl.num_programs(1) - 1)
    def _():
        ah_bf = acc_ref[...].astype(jnp.bfloat16)
        # Single full-width matmul: [mean | log_std] in one (tm, 2*h2p) tile.
        mlog = jnp.dot(ah_bf, w23_ref[...],
                       preferred_element_type=jnp.float32) + b23_ref[...]
        mean = mlog[:, :h2p]
        log_std = mlog[:, h2p:]
        z = mean + noise_ref[...].astype(jnp.float32) * jnp.exp(log_std)
        z_ref[...] = z
        zb_ref[...] = z.astype(jnp.bfloat16)
        zt_ref[...] = jnp.transpose(z).astype(jnp.bfloat16)


def _decoder_kernel(zi_ref, zjt_ref, pre_ref):
    """pre_tile = sigmoid(z_i @ z^T_j); bf16 operands, bf16 store, f32 MXU acc."""
    logits = jnp.dot(zi_ref[...], zjt_ref[...], preferred_element_type=jnp.float32)
    pre_ref[...] = jax.nn.sigmoid(logits).astype(pre_ref.dtype)


# ------------------------------ wrapper ------------------------------------

def vgae_forward(a_norm, x, w1, b1, w2, b2, w3, b3, noise):
    n, f = x.shape
    h1 = w1.shape[1]
    h2 = w2.shape[1]

    # Pad node / feature dims to lane width (128) so all last dims are lane-dense.
    n_pad = _round_up(n, 128)
    fp = _round_up(f, 128)
    h1p = _round_up(h1, 128)
    h2p = _round_up(h2, 128)

    # Tile sizes (multiples of 128 by construction).
    tm = _pick_tile(n_pad, 512)          # output row tile
    if n_pad // tm < 2:                  # give both v7x TensorCores work if possible
        tm = _pick_tile(n_pad, max((n_pad // 2) // 128 * 128, 128))
    tk = _pick_tile(n_pad, 1024)         # reduction tile over A columns
    tn = _pick_tile(n_pad, 512)          # decoder column tile
    tkf = _pick_tile(fp, 512)            # reduction tile over feature dim
    r = n_pad // tm                      # re-read factor of K-streamed operands

    # bf16 operands for MXU / HBM traffic; biases stay f32.
    a_p = _pad2(a_norm, n_pad, n_pad, jnp.bfloat16)
    x_p = _pad2(x, n_pad, fp, jnp.bfloat16)
    w1_p = _pad2(w1, fp, h1p, jnp.bfloat16)
    b1_p = _pad2(b1, 1, h1p, jnp.float32)
    # Concatenate [W2 | W3] (each padded to h2p first so the slice at h2p is exact).
    w23_p = jnp.concatenate([_pad2(w2, h1p, h2p, jnp.bfloat16),
                             _pad2(w3, h1p, h2p, jnp.bfloat16)], axis=1)
    b23_p = jnp.concatenate([_pad2(b2, 1, h2p, jnp.float32),
                             _pad2(b3, 1, h2p, jnp.float32)], axis=1)
    noise_p = _pad2(noise, n_pad, h2p, jnp.bfloat16)

    par_arb = pltpu.CompilerParams(dimension_semantics=("parallel", "arbitrary"))

    # ---- stage 0: XW1 = X @ W1 (reassociation) -----------------------------
    xw1 = pl.pallas_call(
        _proj_kernel,
        out_shape=jax.ShapeDtypeStruct((n_pad, h1p), jnp.bfloat16),
        grid=(n_pad // tm, fp // tkf),
        in_specs=[
            pl.BlockSpec((tm, tkf), lambda i, k: (i, k)),     # X tile
            pl.BlockSpec((tkf, h1p), lambda i, k: (k, 0)),    # W1 K-tile
        ],
        out_specs=pl.BlockSpec((tm, h1p), lambda i, k: (i, 0)),
        scratch_shapes=[pltpu.VMEM((tm, h1p), jnp.float32)],
        compiler_params=par_arb,
        cost_estimate=pl.CostEstimate(
            flops=2 * n_pad * fp * h1p,
            transcendentals=0,
            bytes_accessed=2 * n_pad * fp + r * 2 * fp * h1p + 2 * n_pad * h1p),
    )(x_p, w1_p)

    # ---- stage 1: h = relu(A @ XW1 + b1) -----------------------------------
    h_pad = pl.pallas_call(
        _gcn_hidden_kernel,
        out_shape=jax.ShapeDtypeStruct((n_pad, h1p), jnp.bfloat16),
        grid=(n_pad // tm, n_pad // tk),
        in_specs=[
            pl.BlockSpec((tm, tk), lambda i, k: (i, k)),      # A_norm tile
            pl.BlockSpec((tk, h1p), lambda i, k: (k, 0)),     # XW1 K-tile
            pl.BlockSpec((1, h1p), lambda i, k: (0, 0)),      # b1 (resident)
        ],
        out_specs=pl.BlockSpec((tm, h1p), lambda i, k: (i, 0)),
        scratch_shapes=[pltpu.VMEM((tm, h1p), jnp.float32)],
        compiler_params=par_arb,
        cost_estimate=pl.CostEstimate(
            flops=2 * n_pad * n_pad * h1p,
            transcendentals=0,
            bytes_accessed=2 * n_pad * n_pad + r * 2 * n_pad * h1p
                           + 2 * n_pad * h1p + 4 * h1p),
    )(a_p, xw1, b1_p)

    # ---- stage 2: z = (A@h)@W2 + b2 + noise * exp((A@h)@W3 + b3) -----------
    z_pad, zb_pad, zt_pad = pl.pallas_call(
        functools.partial(_gcn_z_kernel, h2p=h2p),
        out_shape=(
            jax.ShapeDtypeStruct((n_pad, h2p), jnp.float32),    # z (returned)
            jax.ShapeDtypeStruct((n_pad, h2p), jnp.bfloat16),   # z  bf16 (decoder lhs)
            jax.ShapeDtypeStruct((h2p, n_pad), jnp.bfloat16),   # z^T bf16 (decoder rhs)
        ),
        grid=(n_pad // tm, n_pad // tk),
        in_specs=[
            pl.BlockSpec((tm, tk), lambda i, k: (i, k)),        # A_norm tile
            pl.BlockSpec((tk, h1p), lambda i, k: (k, 0)),       # h K-tile (bf16)
            pl.BlockSpec((h1p, 2 * h2p), lambda i, k: (0, 0)),  # [W2|W3] (resident)
            pl.BlockSpec((1, 2 * h2p), lambda i, k: (0, 0)),    # [b2|b3] (resident)
            pl.BlockSpec((tm, h2p), lambda i, k: (i, 0)),       # noise row tile (bf16)
        ],
        out_specs=(
            pl.BlockSpec((tm, h2p), lambda i, k: (i, 0)),
            pl.BlockSpec((tm, h2p), lambda i, k: (i, 0)),
            pl.BlockSpec((h2p, tm), lambda i, k: (0, i)),
        ),
        scratch_shapes=[pltpu.VMEM((tm, h1p), jnp.float32)],
        compiler_params=par_arb,
        cost_estimate=pl.CostEstimate(
            flops=2 * n_pad * n_pad * h1p + 2 * n_pad * h1p * (2 * h2p),
            transcendentals=n_pad * h2p,
            bytes_accessed=2 * n_pad * n_pad + r * 2 * n_pad * h1p
                           + r * (2 * h1p * 2 * h2p + 4 * 2 * h2p)
                           + 2 * n_pad * h2p + 8 * n_pad * h2p),
    )(a_p, h_pad, w23_p, b23_p, noise_p)

    # ---- stage 3: pre = sigmoid(z @ z^T), bf16 I/O -------------------------
    pre_pad = pl.pallas_call(
        _decoder_kernel,
        out_shape=jax.ShapeDtypeStruct((n_pad, n_pad), jnp.bfloat16),
        grid=(n_pad // tm, n_pad // tn),
        in_specs=[
            pl.BlockSpec((tm, h2p), lambda i, j: (i, 0)),   # z row tile (bf16)
            pl.BlockSpec((h2p, tn), lambda i, j: (0, j)),   # z^T col tile (bf16)
        ],
        out_specs=pl.BlockSpec((tm, tn), lambda i, j: (i, j)),
        compiler_params=pltpu.CompilerParams(
            dimension_semantics=("parallel", "parallel")),
        cost_estimate=pl.CostEstimate(
            flops=2 * n_pad * n_pad * h2p,
            transcendentals=n_pad * n_pad,
            bytes_accessed=(n_pad // tn) * 2 * n_pad * h2p
                           + (n_pad // tm) * 2 * n_pad * h2p
                           + 2 * n_pad * n_pad),
    )(zb_pad, zt_pad)

    # Strip padding; cast the small unpadded decoder slice back to f32.
    return pre_pad[:n, :n].astype(jnp.float32), z_pad[:n, :h2]


def make_normalized_adjacency(edges, n):
    """Dense D^{-1/2} A D^{-1/2} with degree clamped to >= 1 (DGL norm='both')."""
    a = jnp.zeros((n, n), jnp.float32)
    for (i, j) in edges:
        a = a.at[i, j].set(1.0)
        a = a.at[j, i].set(1.0)
    deg = jnp.maximum(a.sum(axis=1), 1.0)
    d_inv_sqrt = 1.0 / jnp.sqrt(deg)
    return d_inv_sqrt[:, None] * a * d_inv_sqrt[None, :]


if __name__ == "__main__":
    # Small shapes consistent with the module: N nodes, input_dim, hidden1, hidden2.
    N, INPUT_DIM, HIDDEN1, HIDDEN2 = 8, 16, 32, 16

    key = jax.random.PRNGKey(0)
    k_x, k_w1, k_w2, k_w3, k_noise = jax.random.split(key, 5)

    x = jax.random.normal(k_x, (N, INPUT_DIM), jnp.float32)

    # Deterministic small ring graph with two chords.
    edges = [(i, (i + 1) % N) for i in range(N)] + [(0, 4), (2, 6)]
    a_norm = make_normalized_adjacency(edges, N)

    def glorot(k, shape):
        fan_in, fan_out = shape
        limit = jnp.sqrt(6.0 / (fan_in + fan_out))
        return jax.random.uniform(k, shape, jnp.float32, -limit, limit)

    w1 = glorot(k_w1, (INPUT_DIM, HIDDEN1)); b1 = jnp.zeros((1, HIDDEN1), jnp.float32)
    w2 = glorot(k_w2, (HIDDEN1, HIDDEN2));   b2 = jnp.zeros((1, HIDDEN2), jnp.float32)
    w3 = glorot(k_w3, (HIDDEN1, HIDDEN2));   b3 = jnp.zeros((1, HIDDEN2), jnp.float32)
    noise = jax.random.normal(k_noise, (N, HIDDEN2), jnp.float32)

    pre, z = vgae_forward(a_norm, x, w1, b1, w2, b2, w3, b3, noise)
    jax.block_until_ready((pre, z))
    assert pre.shape == (N, N) and z.shape == (N, HIDDEN2)

    # --- reference that mirrors the kernel's mixed precision pipeline --------
    def bf(a): return a.astype(jnp.bfloat16)
    def f32(a): return a.astype(jnp.float32)

    xw1_emu = bf(jnp.dot(f32(bf(x)), f32(bf(w1))))
    h_emu = bf(jnp.maximum(jnp.dot(f32(bf(a_norm)), f32(xw1_emu)) + b1, 0.0))
    ah_emu = bf(jnp.dot(f32(bf(a_norm)), f32(h_emu)))
    mean_emu = jnp.dot(f32(ah_emu), f32(bf(w2))) + b2
    logstd_emu = jnp.dot(f32(ah_emu), f32(bf(w3))) + b3
    z_emu = mean_emu + f32(bf(noise)) * jnp.exp(logstd_emu)
    zb_emu = f32(bf(z_emu))
    pre_emu = jax.nn.sigmoid(jnp.dot(zb_emu, zb_emu.T))

    assert jnp.allclose(z, z_emu, atol=2e-2), "representation mismatch"
    assert jnp.allclose(pre, pre_emu, atol=2e-2), "adjacency reconstruction mismatch"

    # --- loose sanity check against the pure-f32 module math -----------------
    h_f32 = jnp.maximum(a_norm @ x @ w1 + b1, 0.0)
    mean_f32 = a_norm @ h_f32 @ w2 + b2
    logstd_f32 = a_norm @ h_f32 @ w3 + b3
    z_f32 = mean_f32 + noise * jnp.exp(logstd_f32)
    assert jnp.allclose(z, z_f32, atol=1e-1, rtol=1e-1), "f32 semantic drift too large"

    print("KERNEL_OK")
</pallas_src>

<mosaic_0001>
module attributes {stable_mosaic.version = 11 : i64} {
  func.func @_proj_kernel(%arg0: i32, %arg1: i32, %arg2: memref<128x128xbf16, #tpu.memory_space<vmem>>, %arg3: memref<128x128xbf16, #tpu.memory_space<vmem>>, %arg4: memref<128x128xbf16, #tpu.memory_space<vmem>>, %arg5: memref<128x128xf32, #tpu.memory_space<vmem>>) attributes {dimension_semantics = [#tpu.dimension_semantics<parallel>, #tpu.dimension_semantics<arbitrary>], iteration_bounds = array<i64: 1, 1>, scalar_prefetch = 0 : i64, scratch_operands = 1 : i64, tpu.core_type = #tpu.core_type<tc>, window_params = [{transform_indices = @transform_0, window_bounds = array<i64: 128, 128>}, {transform_indices = @transform_1, window_bounds = array<i64: 128, 128>}, {transform_indices = @transform_2, window_bounds = array<i64: 128, 128>}]} {
    %c0_i32 = arith.constant 0 : i32
    %0 = arith.cmpi eq, %arg1, %c0_i32 : i32
    %1 = arith.extui %0 : i1 to i32
    %c0_i32_0 = arith.constant 0 : i32
    %2 = arith.cmpi ne, %1, %c0_i32_0 : i32
    scf.if %2 {
      %cst_10 = arith.constant 0.000000e+00 : f32
      %12 = vector.broadcast %cst_10 : f32 to vector<128x128xf32>
      %c0_11 = arith.constant 0 : index
      %c0_12 = arith.constant 0 : index
      %13 = vector.load %arg5[%c0_11, %c0_12] : memref<128x128xf32, #tpu.memory_space<vmem>>, vector<128x128xf32>
      tpu.vector_store %arg5[%c0_11, %c0_12], %12 {strides = array<i32>} : memref<128x128xf32, #tpu.memory_space<vmem>>, vector<128x128xf32>,
    } else {
    }
    %c0 = arith.constant 0 : index
    %c0_1 = arith.constant 0 : index
    %3 = vector.load %arg5[%c0, %c0_1] : memref<128x128xf32, #tpu.memory_space<vmem>>, vector<128x128xf32>
    %c0_2 = arith.constant 0 : index
    %c0_3 = arith.constant 0 : index
    %4 = vector.load %arg2[%c0_2, %c0_3] : memref<128x128xbf16, #tpu.memory_space<vmem>>, vector<128x128xbf16>
    %c0_4 = arith.constant 0 : index
    %c0_5 = arith.constant 0 : index
    %5 = vector.load %arg3[%c0_4, %c0_5] : memref<128x128xbf16, #tpu.memory_space<vmem>>, vector<128x128xbf16>
    %cst = arith.constant dense<0.000000e+00> : vector<128x128xf32>
    %6 = tpu.matmul %4, %5, %cst {dimension_numbers = #tpu.dot_dimension_numbers<[1], [0], [0], [1], [0, 0, 1, 1], [], []>} : vector<128x128xbf16>, vector<128x128xbf16>, vector<128x128xf32> -> vector<128x128xf32>
    %7 = arith.addf %3, %6 : vector<128x128xf32>
    %c0_6 = arith.constant 0 : index
    %c0_7 = arith.constant 0 : index
    %8 = vector.load %arg5[%c0_6, %c0_7] : memref<128x128xf32, #tpu.memory_space<vmem>>, vector<128x128xf32>
    tpu.vector_store %arg5[%c0_6, %c0_7], %7 {strides = array<i32>} : memref<128x128xf32, #tpu.memory_space<vmem>>, vector<128x128xf32>,
    %c0_i32_8 = arith.constant 0 : i32
    %9 = arith.cmpi eq, %arg1, %c0_i32_8 : i32
    %10 = arith.extui %9 : i1 to i32
    %c0_i32_9 = arith.constant 0 : i32
    %11 = arith.cmpi ne, %10, %c0_i32_9 : i32
    scf.if %11 {
      %c0_10 = arith.constant 0 : index
      %c0_11 = arith.constant 0 : index
      %12 = vector.load %arg5[%c0_10, %c0_11] : memref<128x128xf32, #tpu.memory_space<vmem>>, vector<128x128xf32>
      %13 = arith.truncf %12 : vector<128x128xf32> to vector<128x128xbf16>
      %c0_12 = arith.constant 0 : index
      %c0_13 = arith.constant 0 : index
      %14 = vector.load %arg4[%c0_12, %c0_13] : memref<128x128xbf16, #tpu.memory_space<vmem>>, vector<128x128xbf16>
      tpu.vector_store %arg4[%c0_12, %c0_13], %13 {strides = array<i32>} : memref<128x128xbf16, #tpu.memory_space<vmem>>, vector<128x128xbf16>,
    } else {
    }
    return
  }
  func.func @transform_0(%arg0: i32, %arg1: i32) -> (i32, i32) {
    %c0_i32 = arith.constant 0 : i32
    return %arg0, %arg1 : i32, i32
  }
  func.func @transform_1(%arg0: i32, %arg1: i32) -> (i32, i32) {
    %c0_i32 = arith.constant 0 : i32
    %c0_i32_0 = arith.constant 0 : i32
    return %arg1, %c0_i32 : i32, i32
  }
  func.func @transform_2(%arg0: i32, %arg1: i32) -> (i32, i32) {
    %c0_i32 = arith.constant 0 : i32
    %c0_i32_0 = arith.constant 0 : i32
    return %arg0, %c0_i32 : i32, i32
  }
}

</mosaic_0001>

<bundles_post_ra>
// kernel: tpu_custom_call.1
= control target key start
LH: loop header
LB: loop body
LE: loop exit
PB: predicated region body
PF: predicated region fallthrough
CT: control target
= control target key end

     0   :  { %7 = vsyncpa [#allocation4], 0  ;;  %s768_s0 = inlined_call_operand.hbm [shape: bf16[128,128], index: 0, kind: input, shape index: {}]   ;;  %s769_s1 = inlined_call_operand.hbm [shape: bf16[128,128], index: 1, kind: input, shape index: {}]   ;;  %s770_s2 = inlined_call_operand.hbm [shape: bf16[128,128], index: 2, kind: output, shape index: {}]  }
   0x1   :  { %8 = vsyncpa [#allocation7], 0 }
   0x2   :  { %9 = vsyncpa [#allocation5], 0  ;;  %s703_s9 = smov [#allocation3]   ;;  %s631_s13 = scalar_lea.hbm %s768_s0, 1024 }
   0x3   :  { %s15_s10 = sshll.u32 %s703_s9, 4  ;;  %p632_p0 = scmp.ne.s32.totalorder %s768_s0, %s631_s13  ;;  %s16_s10 = int_to_ptr.vmem [resolvable:$true] %s15_s10 }
   0x4   :  { %p635_p1 = scmp.lt.u32.totalorder %s631_s13, %s768_s0 }
   0x6   :  { %p637_p2 = pnand %p635_p1, %p632_p0 }
   0x8   :  { %640 = shalt.err (!%p637_p2)
}
   0x9   :  { %s641_s18 = scalar_lea.vmem %s16_s10, 1024  ;;  %p646_p4 = scmp.lt.s32.totalorder %s16_s10, %s16_s10 }
   0xa   :  { %p642_p3 = scmp.ne.s32.totalorder %s16_s10, %s641_s18  ;;  %p647_p5 = scmp.lt.s32.totalorder %s641_s18, %s641_s18 }
   0xc   :  { %p648_p6 = por %p647_p5, %p646_p4 }
   0xe   :  { %p649_p7 = pnand %p648_p6, %p642_p3 }
  0x10   :  { %652 = shalt.err (!%p649_p7)
}
  0x11   :  { %s704_s19 = smov 64   ;;  %s705_s20 = smov 4  }
  0x12   :  { %21 = dma.hbm_to_vmem [thread:$0]  %s768_s0, 1024, %s16_s10, [#allocation4], %s704_s19, %s704_s19, %s705_s20  }
  0x13   :  { %s706_s23 = smov [#allocation6]   ;;  %s653_s27 = scalar_lea.hbm %s769_s1, 1024 }
  0x14   :  { %s27_s24 = sshll.u32 %s706_s23, 4  ;;  %p654_p8 = scmp.ne.s32.totalorder %s769_s1, %s653_s27  ;;  %s28_s24 = int_to_ptr.vmem [resolvable:$true] %s27_s24 }
  0x15   :  { %p657_p9 = scmp.lt.u32.totalorder %s653_s27, %s769_s1 }
  0x17   :  { %p659_p10 = pnand %p657_p9, %p654_p8 }
  0x19   :  { %662 = shalt.err (!%p659_p10)
}
  0x1a   :  { %s663_s4 = scalar_lea.vmem %s28_s24, 1024  ;;  %p668_p12 = scmp.lt.s32.totalorder %s28_s24, %s28_s24 }
  0x1b   :  { %p664_p11 = scmp.ne.s32.totalorder %s28_s24, %s663_s4  ;;  %p669_p13 = scmp.lt.s32.totalorder %s663_s4, %s663_s4 }
  0x1d   :  { %p670_p0 = por %p669_p13, %p668_p12 }
  0x1f   :  { %p671_p1 = pnand %p670_p0, %p664_p11 }
  0x21   :  { %674 = shalt.err (!%p671_p1)
}
  0x22   :  { %33 = dma.hbm_to_vmem [thread:$0]  %s769_s1, 1024, %s28_s24, [#allocation7], %s704_s19, %s704_s19, %s705_s20  }
  0x23   :  { %697 = dma.done.wait [#allocation4], 1024  }
  0x24   :  { %698 = vsyncadd [#allocation4], 4294966272 }
  0x25   :  { %699 = dma.done.wait [#allocation7], 1024  }
  0x26   :  { %700 = vsyncadd [#allocation7], 4294966272  ;;  %v615_v0 = vld [vmem:[#allocation6] sm:$0xff]   ;;  %v616_v1 = vld [vmem:[#allocation6 + $0x8] sm:$0xff]   ;;  %s707_s1 = smov [#allocation8]  }
  0x27   :  { %562 = vmatprep.subr.bf16.mxu0 %v615_v0  ;;  %594 = vmatprep.subr.bf16.mxu1 %v615_v0  ;;  %v617_v2 = vld [vmem:[#allocation6 + $0x10] sm:$0xff]   ;;  %v618_v3 = vld [vmem:[#allocation6 + $0x18] sm:$0xff]   ;;  %v623_v4 = vld [vmem:[#allocation3] sm:$0xff]   ;;  %s438_s6 = sshll.u32 %s707_s1, 4  ;;  %s439_s6 = int_to_ptr.vmem [resolvable:$true] %s438_s6 }
  0x28   :  { %563 = vmatpush3.bf16.msra.mxu0 %v615_v0  ;;  %602 = vmatpush3.bf16.msra.mxu1 %v615_v0  ;;  %v624_v5 = vld [vmem:[#allocation3 + $0x20] sm:$0xff]   ;;  %v620_v7 = vld [vmem:[#allocation6 + $0x28] sm:$0xff]   ;;  %v621_v8 = vld [vmem:[#allocation6 + $0x30] sm:$0xff]   ;;  %s675_s7 = scalar_lea.vmem %s439_s6, 1024  ;;  %p680_p3 = scmp.lt.s32.totalorder %s439_s6, %s439_s6 }
  0x29   :  { %564 = vmatprep.subr.bf16.mxu0 %v616_v1  ;;  %595 = vmatprep.subr.bf16.mxu1 %v616_v1  ;;  %v619_v6 = vld [vmem:[#allocation6 + $0x20] sm:$0xff]   ;;  %v622_v9 = vld [vmem:[#allocation6 + $0x38] sm:$0xff]   ;;  %v625_v10 = vld [vmem:[#allocation3 + $0x8] sm:$0xff]   ;;  %p676_p2 = scmp.ne.s32.totalorder %s439_s6, %s675_s7  ;;  %p681_p4 = scmp.lt.s32.totalorder %s675_s7, %s675_s7 }
  0x2a   :  { %578 = vmatprep.mubr.bf16.mxu0 %v623_v4  ;;  %586 = vmatprep.mubr.bf16.mxu1 %v624_v5  ;;  %v626_v11 = vld [vmem:[#allocation3 + $0x28] sm:$0xff]   ;;  %v627_v12 = vld [vmem:[#allocation3 + $0x10] sm:$0xff]   ;;  %v629_v14 = vld [vmem:[#allocation3 + $0x18] sm:$0xff]  }
  0x2b   :  { %v628_v13 = vld [vmem:[#allocation3 + $0x30] sm:$0xff]   ;;  %v630_v15 = vld [vmem:[#allocation3 + $0x38] sm:$0xff]   ;;  %p682_p5 = por %p681_p4, %p680_p3 }
  0x2c   :  { %565 = vmatpush3.bf16.msra.mxu0 %v616_v1  ;;  %603 = vmatpush3.bf16.msra.mxu1 %v616_v1 }
  0x2d   :  { %566 = vmatprep.subr.bf16.mxu0 %v617_v2  ;;  %596 = vmatprep.subr.bf16.mxu1 %v617_v2  ;;  %p683_p6 = pnand %p682_p5, %p676_p2 }
  0x30   :  { %567 = vmatpush3.bf16.msra.mxu0 %v617_v2  ;;  %604 = vmatpush3.bf16.msra.mxu1 %v617_v2 }
  0x31   :  { %568 = vmatprep.subr.bf16.mxu0 %v618_v3  ;;  %597 = vmatprep.subr.bf16.mxu1 %v618_v3 }
  0x34   :  { %569 = vmatpush3.bf16.msra.mxu0 %v618_v3  ;;  %605 = vmatpush3.bf16.msra.mxu1 %v618_v3 }
  0x35   :  { %570 = vmatprep.subr.bf16.mxu0 %v619_v6  ;;  %598 = vmatprep.subr.bf16.mxu1 %v619_v6 }
  0x38   :  { %571 = vmatpush3.bf16.msra.mxu0 %v619_v6  ;;  %606 = vmatpush3.bf16.msra.mxu1 %v619_v6 }
  0x39   :  { %572 = vmatprep.subr.bf16.mxu0 %v620_v7  ;;  %599 = vmatprep.subr.bf16.mxu1 %v620_v7 }
  0x3c   :  { %573 = vmatpush3.bf16.msra.mxu0 %v620_v7  ;;  %607 = vmatpush3.bf16.msra.mxu1 %v620_v7 }
  0x3d   :  { %574 = vmatprep.subr.bf16.mxu0 %v621_v8  ;;  %600 = vmatprep.subr.bf16.mxu1 %v621_v8 }
  0x40   :  { %575 = vmatpush3.bf16.msra.mxu0 %v621_v8  ;;  %608 = vmatpush3.bf16.msra.mxu1 %v621_v8 }
  0x41   :  { %576 = vmatprep.subr.bf16.mxu0 %v622_v9  ;;  %601 = vmatprep.subr.bf16.mxu1 %v622_v9 }
  0x44   :  { %577 = vmatpush3.bf16.msra.mxu0 %v622_v9  ;;  %609 = vmatpush3.bf16.msra.mxu1 %v622_v9 }
  0x47   :  { %579 = vmatmul.mubr.bf16.vlgmr.msra.gmra.mrb[0].mxu0 %v625_v10  ;;  %587 = vmatmul.mubr.bf16.vlgmr.msra.gmra.mrb[0].mxu1 %v626_v11 }
  0x48   :  { %582 = vmatprep.mubr.bf16.mxu0 %v627_v12  ;;  %590 = vmatprep.mubr.bf16.mxu1 %v628_v13 }
  0x4f   :  { %583 = vmatmul.mubr.bf16.gmra.mrb[4].mxu0 %v629_v14  ;;  %591 = vmatmul.mubr.bf16.gmra.mrb[4].mxu1 %v630_v15 }
 0x11a   :  { %v580_v16 = vpop.f32.mrb[0].mxu0  ;;  %v588_v17 = vpop.f32.mrb[0].mxu1 }
 0x11b   :  { %v239_v18 = vpop.f32.mrb[1].mxu0  ;;  %v271_v19 = vpop.f32.mrb[1].mxu1 }
 0x11c   :  { %v581_v20 = vpop.f32.mrb[2].mxu0  ;;  %v589_v21 = vpop.f32.mrb[2].mxu1 }
 0x11d   :  { %v507_v22 = vpack.c.bf16 %v581_v20, %v580_v16  ;;  %v527_v23 = vpack.c.bf16 %v589_v21, %v588_v17  ;;  %v242_v24 = vpop.f32.mrb[3].mxu0  ;;  %v274_v25 = vpop.f32.mrb[3].mxu1 }
 0x11e   :  { %v502_v26 = vpack.c.bf16 %v242_v24, %v239_v18  ;;  %v522_v27 = vpack.c.bf16 %v274_v25, %v271_v19 }
 0x11f   :  { %539 = vst [vmem:[#allocation8 + $0x8] sm:$0xff] %v507_v22   ;;  %543 = vst [vmem:[#allocation8 + $0x28] sm:$0xff] %v527_v23  }
 0x120   :  { %503 = vst [vmem:[#allocation8] sm:$0xff] %v502_v26   ;;  %542 = vst [vmem:[#allocation8 + $0x20] sm:$0xff] %v522_v27  }
 0x122   :  { %v584_v28 = vpop.f32.mrb[4].mxu0  ;;  %v592_v29 = vpop.f32.mrb[4].mxu1 }
 0x123   :  { %v255_v30 = vpop.f32.mrb[5].mxu0  ;;  %v287_v31 = vpop.f32.mrb[5].mxu1 }
 0x124   :  { %v585_v32 = vpop.f32.mrb[6].mxu0  ;;  %v593_v33 = vpop.f32.mrb[6].mxu1 }
 0x125   :  { %v517_v34 = vpack.c.bf16 %v585_v32, %v584_v28  ;;  %v537_v35 = vpack.c.bf16 %v593_v33, %v592_v29  ;;  %v258_v36 = vpop.f32.mrb[7].mxu0  ;;  %v290_v37 = vpop.f32.mrb[7].mxu1 }
 0x126   :  { %v512_v38 = vpack.c.bf16 %v258_v36, %v255_v30  ;;  %v532_v39 = vpack.c.bf16 %v290_v37, %v287_v31 }
 0x127   :  { %541 = vst [vmem:[#allocation8 + $0x18] sm:$0xff] %v517_v34   ;;  %545 = vst [vmem:[#allocation8 + $0x38] sm:$0xff] %v537_v35  }
 0x128   :  { %540 = vst [vmem:[#allocation8 + $0x10] sm:$0xff] %v512_v38   ;;  %544 = vst [vmem:[#allocation8 + $0x30] sm:$0xff] %v532_v39  }
 0x129   :  { %686 = shalt.err (!%p683_p6)
}
 0x12a   :  { %s687_s10 = scalar_lea.hbm %s770_s2, 1024 }
 0x12b   :  { %p688_p7 = scmp.ne.s32.totalorder %s770_s2, %s687_s10  ;;  %p691_p8 = scmp.lt.u32.totalorder %s687_s10, %s770_s2 }
 0x12d   :  { %p693_p9 = pnand %p691_p8, %p688_p7 }
 0x12f   :  { %696 = shalt.err (!%p693_p9)
}
 0x130   :  { %444 = dma.vmem_to_hbm [thread:$0]  %s439_s6, 1024, %s770_s2, [#allocation5], %s704_s19, %s704_s19, %s705_s20  }
 0x131   :  { %701 = dma.done.wait [#allocation5], 1024  }
 0x132   :  { %702 = vsyncadd [#allocation5], 4294966272 }
 0x133   :  { %448 = vsyncpa [#allocation4], 1 }
 0x134   :  { %449 = vsyncpa [#allocation7], 1 }
 0x135   :  { %450 = vsyncpa [#allocation5], 1 }

</bundles_post_ra>
